<compile_context>
chip_gen: v5e
topology: v5e:2x2
jax: 0.10.0
libtpu: 0.0.40
codegen_flags: <defaults>
</compile_context>

<pallas_src>
import functools

import jax
import jax.numpy as jnp
import numpy as np
from jax.experimental import pallas as pl
from jax.experimental.pallas import tpu as pltpu

HIDDEN = 128


def _round_up(n, m):
    return ((n + m - 1) // m) * m


# ---------------------------------------------------------------------------
# Kernel: one batch tile through the whole 3-layer MLP.
# Matmuls hit the MXU in bf16 with f32 accumulation; tanh (EUP) and bias adds
# (VPU) stay in f32.
# ---------------------------------------------------------------------------
def actor_mlp_kernel(x_ref, w1_ref, b1_ref, w2_ref, b2_ref, w3_ref, b3_ref,
                     out_ref):
    x = x_ref[...].astype(jnp.bfloat16)
    h1 = jnp.tanh(
        jnp.dot(x, w1_ref[...], preferred_element_type=jnp.float32)
        + b1_ref[...])
    h2 = jnp.tanh(
        jnp.dot(h1.astype(jnp.bfloat16), w2_ref[...],
                preferred_element_type=jnp.float32)
        + b2_ref[...])
    logits = (jnp.dot(h2.astype(jnp.bfloat16), w3_ref[...],
                      preferred_element_type=jnp.float32)
              + b3_ref[...])
    out_ref[...] = logits.astype(out_ref.dtype)


@functools.partial(jax.jit, static_argnames=("tb",))
def actor_forward(x, params, *, tb=512):
    """x: [B, state_dim] float32 -> logits: [B, action_dim] float32."""
    w1, b1, w2, b2, w3, b3 = params
    B, state_dim = x.shape
    action_dim = w3.shape[1]

    # ---- tile/pad the batch axis ----
    tb = min(tb, _round_up(B, 8))          # small demo batches -> tiny tile
    b_pad = _round_up(B, tb)
    if b_pad != B:
        x = jnp.pad(x, ((0, b_pad - B), (0, 0)))

    # ---- lane-dense output: pad the last layer to a multiple of 128 lanes ----
    out_pad = _round_up(action_dim, 128)
    if out_pad != action_dim:
        w3 = jnp.pad(w3, ((0, 0), (0, out_pad - action_dim)))
        b3 = jnp.pad(b3, ((0, 0), (0, out_pad - action_dim)))

    # ---- bf16 matmul operands (weights only; biases / activations stay f32) ----
    w1b, w2b, w3b = (w.astype(jnp.bfloat16) for w in (w1, w2, w3))

    grid = (b_pad // tb,)
    const = lambda i: (0, 0)   # weights/biases: same block every step -> resident

    cost = pl.CostEstimate(
        flops=2 * b_pad * (state_dim * HIDDEN + HIDDEN * HIDDEN
                           + HIDDEN * out_pad),
        transcendentals=2 * b_pad * HIDDEN,
        bytes_accessed=(b_pad * state_dim * 4 + b_pad * out_pad * 4
                        + (state_dim * HIDDEN + HIDDEN * HIDDEN
                           + HIDDEN * out_pad) * 2
                        + (2 * HIDDEN + out_pad) * 4),
    )

    out = pl.pallas_call(
        actor_mlp_kernel,
        out_shape=jax.ShapeDtypeStruct((b_pad, out_pad), jnp.float32),
        grid=grid,
        in_specs=[
            pl.BlockSpec((tb, state_dim), lambda i: (i, 0)),      # x tile
            pl.BlockSpec((state_dim, HIDDEN), const),             # w1 (resident)
            pl.BlockSpec((1, HIDDEN), const),                     # b1
            pl.BlockSpec((HIDDEN, HIDDEN), const),                # w2
            pl.BlockSpec((1, HIDDEN), const),                     # b2
            pl.BlockSpec((HIDDEN, out_pad), const),               # w3 (padded)
            pl.BlockSpec((1, out_pad), const),                    # b3 (padded)
        ],
        out_specs=pl.BlockSpec((tb, out_pad), lambda i: (i, 0)),
        compiler_params=pltpu.CompilerParams(
            dimension_semantics=("parallel",)),                   # 2 TCs on v7x
        cost_estimate=cost,
    )(x, w1b, b1, w2b, b2, w3b, b3)

    return out[:B, :action_dim]


# ---------------------------------------------------------------------------
# Deterministic parameter init (mirrors layer_init: orthogonal weight, 0 bias)
# ---------------------------------------------------------------------------
def make_actor_params(key, state_dim, action_dim, hidden=HIDDEN):
    k1, k2, k3 = jax.random.split(key, 3)
    ortho = jax.nn.initializers.orthogonal

    # PyTorch Linear weight is [out, in]; init with that shape, then transpose
    # to [in, out] for the kernel.
    w1 = ortho(scale=np.sqrt(2))(k1, (hidden, state_dim), jnp.float32).T
    b1 = jnp.zeros((1, hidden), jnp.float32)
    w2 = ortho(scale=np.sqrt(2))(k2, (hidden, hidden), jnp.float32).T
    b2 = jnp.zeros((1, hidden), jnp.float32)
    w3 = ortho(scale=0.01)(k3, (action_dim, hidden), jnp.float32).T
    b3 = jnp.zeros((1, action_dim), jnp.float32)
    return (w1, b1, w2, b2, w3, b3)


def actor_forward_ref_f32(x, params):
    w1, b1, w2, b2, w3, b3 = params
    h1 = jnp.tanh(x @ w1 + b1)
    h2 = jnp.tanh(h1 @ w2 + b2)
    return h2 @ w3 + b3


def actor_forward_ref_bf16(x, params):
    """Same bf16-operand / f32-accumulate math as the kernel, in plain JAX."""
    w1, b1, w2, b2, w3, b3 = params
    bf = jnp.bfloat16
    d = lambda a, b: jnp.dot(a.astype(bf), b.astype(bf),
                             preferred_element_type=jnp.float32)
    h1 = jnp.tanh(d(x, w1) + b1)
    h2 = jnp.tanh(d(h1, w2) + b2)
    return d(h2, w3) + b3


if __name__ == "__main__":
    key = jax.random.PRNGKey(0)
    k_param, k_x = jax.random.split(key)

    batch, state_dim, action_dim = 8, 16, 8
    params = make_actor_params(k_param, state_dim, action_dim)
    x = jax.random.normal(k_x, (batch, state_dim), dtype=jnp.float32)

    logits = actor_forward(x, params)
    logits = jax.block_until_ready(logits)
    assert logits.shape == (batch, action_dim)

    # Tight check against a JAX reference using identical bf16/f32 math.
    ref_bf16 = actor_forward_ref_bf16(x, params)
    assert jnp.allclose(logits, ref_bf16, atol=1e-4, rtol=1e-4)

    # Loose sanity check against the pure-f32 PyTorch-equivalent math.
    ref_f32 = actor_forward_ref_f32(x, params)
    assert jnp.allclose(logits, ref_f32, atol=3e-2, rtol=3e-2)

    # TODO(synk): get_action's Categorical sampling / log_softmax / action-mask
    # fill are host-side glue in the original module, not part of the hot-path
    # kernel; they remain plain JAX ops on the returned logits.
    print("KERNEL_OK")
</pallas_src>

<mosaic_0001>
module attributes {stable_mosaic.version = 11 : i64} {
  func.func @actor_mlp_kernel(%arg0: i32, %arg1: memref<8x16xf32, #tpu.memory_space<vmem>>, %arg2: memref<16x128xbf16, #tpu.memory_space<vmem>>, %arg3: memref<1x128xf32, #tpu.memory_space<vmem>>, %arg4: memref<128x128xbf16, #tpu.memory_space<vmem>>, %arg5: memref<1x128xf32, #tpu.memory_space<vmem>>, %arg6: memref<128x128xbf16, #tpu.memory_space<vmem>>, %arg7: memref<1x128xf32, #tpu.memory_space<vmem>>, %arg8: memref<8x128xf32, #tpu.memory_space<vmem>>) attributes {dimension_semantics = [#tpu.dimension_semantics<parallel>], iteration_bounds = array<i64: 1>, scalar_prefetch = 0 : i64, scratch_operands = 0 : i64, tpu.core_type = #tpu.core_type<tc>, window_params = [{transform_indices = @transform_0, window_bounds = array<i64: 8, 16>}, {pipeline_mode = #tpu.pipeline_mode<synchronous>, transform_indices = @transform_1, window_bounds = array<i64: 16, 128>}, {pipeline_mode = #tpu.pipeline_mode<synchronous>, transform_indices = @transform_2, window_bounds = array<i64: 1, 128>}, {pipeline_mode = #tpu.pipeline_mode<synchronous>, transform_indices = @transform_3, window_bounds = array<i64: 128, 128>}, {pipeline_mode = #tpu.pipeline_mode<synchronous>, transform_indices = @transform_4, window_bounds = array<i64: 1, 128>}, {pipeline_mode = #tpu.pipeline_mode<synchronous>, transform_indices = @transform_5, window_bounds = array<i64: 128, 128>}, {pipeline_mode = #tpu.pipeline_mode<synchronous>, transform_indices = @transform_6, window_bounds = array<i64: 1, 128>}, {transform_indices = @transform_7, window_bounds = array<i64: 8, 128>}]} {
    %c0 = arith.constant 0 : index
    %c0_0 = arith.constant 0 : index
    %0 = vector.load %arg1[%c0, %c0_0] : memref<8x16xf32, #tpu.memory_space<vmem>>, vector<8x16xf32>
    %1 = arith.truncf %0 : vector<8x16xf32> to vector<8x16xbf16>
    %c0_1 = arith.constant 0 : index
    %c0_2 = arith.constant 0 : index
    %2 = vector.load %arg2[%c0_1, %c0_2] : memref<16x128xbf16, #tpu.memory_space<vmem>>, vector<16x128xbf16>
    %cst = arith.constant dense<0.000000e+00> : vector<8x128xf32>
    %3 = tpu.matmul %1, %2, %cst {dimension_numbers = #tpu.dot_dimension_numbers<[1], [0], [0], [1], [0, 0, 1, 1], [], []>} : vector<8x16xbf16>, vector<16x128xbf16>, vector<8x128xf32> -> vector<8x128xf32>
    %c0_3 = arith.constant 0 : index
    %c0_4 = arith.constant 0 : index
    %4 = vector.load %arg3[%c0_3, %c0_4] : memref<1x128xf32, #tpu.memory_space<vmem>>, vector<1x128xf32>
    %5 = vector.broadcast %4 : vector<1x128xf32> to vector<8x128xf32>
    %6 = arith.addf %3, %5 : vector<8x128xf32>
    %7 = math.tanh %6 : vector<8x128xf32>
    %8 = arith.truncf %7 : vector<8x128xf32> to vector<8x128xbf16>
    %c0_5 = arith.constant 0 : index
    %c0_6 = arith.constant 0 : index
    %9 = vector.load %arg4[%c0_5, %c0_6] : memref<128x128xbf16, #tpu.memory_space<vmem>>, vector<128x128xbf16>
    %cst_7 = arith.constant dense<0.000000e+00> : vector<8x128xf32>
    %10 = tpu.matmul %8, %9, %cst_7 {dimension_numbers = #tpu.dot_dimension_numbers<[1], [0], [0], [1], [0, 0, 1, 1], [], []>} : vector<8x128xbf16>, vector<128x128xbf16>, vector<8x128xf32> -> vector<8x128xf32>
    %c0_8 = arith.constant 0 : index
    %c0_9 = arith.constant 0 : index
    %11 = vector.load %arg5[%c0_8, %c0_9] : memref<1x128xf32, #tpu.memory_space<vmem>>, vector<1x128xf32>
    %12 = vector.broadcast %11 : vector<1x128xf32> to vector<8x128xf32>
    %13 = arith.addf %10, %12 : vector<8x128xf32>
    %14 = math.tanh %13 : vector<8x128xf32>
    %15 = arith.truncf %14 : vector<8x128xf32> to vector<8x128xbf16>
    %c0_10 = arith.constant 0 : index
    %c0_11 = arith.constant 0 : index
    %16 = vector.load %arg6[%c0_10, %c0_11] : memref<128x128xbf16, #tpu.memory_space<vmem>>, vector<128x128xbf16>
    %cst_12 = arith.constant dense<0.000000e+00> : vector<8x128xf32>
    %17 = tpu.matmul %15, %16, %cst_12 {dimension_numbers = #tpu.dot_dimension_numbers<[1], [0], [0], [1], [0, 0, 1, 1], [], []>} : vector<8x128xbf16>, vector<128x128xbf16>, vector<8x128xf32> -> vector<8x128xf32>
    %c0_13 = arith.constant 0 : index
    %c0_14 = arith.constant 0 : index
    %18 = vector.load %arg7[%c0_13, %c0_14] : memref<1x128xf32, #tpu.memory_space<vmem>>, vector<1x128xf32>
    %19 = vector.broadcast %18 : vector<1x128xf32> to vector<8x128xf32>
    %20 = arith.addf %17, %19 : vector<8x128xf32>
    %c0_15 = arith.constant 0 : index
    %c0_16 = arith.constant 0 : index
    %21 = vector.load %arg8[%c0_15, %c0_16] : memref<8x128xf32, #tpu.memory_space<vmem>>, vector<8x128xf32>
    tpu.vector_store %arg8[%c0_15, %c0_16], %20 {strides = array<i32>} : memref<8x128xf32, #tpu.memory_space<vmem>>, vector<8x128xf32>,
    return
  }
  func.func @transform_0(%arg0: i32) -> (i32, i32) {
    %c0_i32 = arith.constant 0 : i32
    %c0_i32_0 = arith.constant 0 : i32
    return %arg0, %c0_i32 : i32, i32
  }
  func.func @transform_1(%arg0: i32) -> (i32, i32) {
    %c0_i32 = arith.constant 0 : i32
    %c0_i32_0 = arith.constant 0 : i32
    %c0_i32_1 = arith.constant 0 : i32
    return %c0_i32, %c0_i32_0 : i32, i32
  }
  func.func @transform_2(%arg0: i32) -> (i32, i32) {
    %c0_i32 = arith.constant 0 : i32
    %c0_i32_0 = arith.constant 0 : i32
    %c0_i32_1 = arith.constant 0 : i32
    return %c0_i32, %c0_i32_0 : i32, i32
  }
  func.func @transform_3(%arg0: i32) -> (i32, i32) {
    %c0_i32 = arith.constant 0 : i32
    %c0_i32_0 = arith.constant 0 : i32
    %c0_i32_1 = arith.constant 0 : i32
    return %c0_i32, %c0_i32_0 : i32, i32
  }
  func.func @transform_4(%arg0: i32) -> (i32, i32) {
    %c0_i32 = arith.constant 0 : i32
    %c0_i32_0 = arith.constant 0 : i32
    %c0_i32_1 = arith.constant 0 : i32
    return %c0_i32, %c0_i32_0 : i32, i32
  }
  func.func @transform_5(%arg0: i32) -> (i32, i32) {
    %c0_i32 = arith.constant 0 : i32
    %c0_i32_0 = arith.constant 0 : i32
    %c0_i32_1 = arith.constant 0 : i32
    return %c0_i32, %c0_i32_0 : i32, i32
  }
  func.func @transform_6(%arg0: i32) -> (i32, i32) {
    %c0_i32 = arith.constant 0 : i32
    %c0_i32_0 = arith.constant 0 : i32
    %c0_i32_1 = arith.constant 0 : i32
    return %c0_i32, %c0_i32_0 : i32, i32
  }
  func.func @transform_7(%arg0: i32) -> (i32, i32) {
    %c0_i32 = arith.constant 0 : i32
    %c0_i32_0 = arith.constant 0 : i32
    return %arg0, %c0_i32 : i32, i32
  }
}

</mosaic_0001>

<bundles_post_ra>
// kernel: actor_forward.1
= control target key start
LH: loop header
LB: loop body
LE: loop exit
PB: predicated region body
PF: predicated region fallthrough
CT: control target
= control target key end

     0   :  { %vm42_vm0 = vcmask 130048   ;;  %s469_s0 = inlined_call_operand.vmem [shape: f32[8,16], index: 0, kind: input, shape index: {}]   ;;  %s470_s1 = inlined_call_operand.vmem [shape: bf16[16,128], index: 1, kind: input, shape index: {}]   ;;  %s471_s2 = inlined_call_operand.vmem [shape: f32[1,128], index: 2, kind: input, shape index: {}]   ;;  %s472_s3 = inlined_call_operand.vmem [shape: bf16[128,128], index: 3, kind: input, shape index: {}]   ;;  %s473_s4 = inlined_call_operand.vmem [shape: f32[1,128], index: 4, kind: input, shape index: {}]   ;;  %s474_s5 = inlined_call_operand.vmem [shape: bf16[128,128], index: 5, kind: input, shape index: {}]   ;;  %s475_s6 = inlined_call_operand.vmem [shape: f32[1,128], index: 6, kind: input, shape index: {}]   ;;  %s476_s7 = inlined_call_operand.hbm [shape: f32[8,128], index: 7, kind: output, shape index: {}]  }
   0x1   :  { %v311_v0 = vld [vmem:[%s470_s1] sm:$0xff]  ;;  %v319_v2 = vld [vmem:[%s472_s3 + $0x38] sm:$0xff]  ;;  %v318_v4 = vld [vmem:[%s472_s3 + $0x30] sm:$0xff] }
   0x2   :  { %v28_v1 = vld [vmem:[%s469_s0] sm:$0xff]  ;;  %53 = vmatpush.bf16.msra.mxu0 %v311_v0  ;;  %129 = vmatpush.bf16.msra.mxu1 %v319_v2 }
   0x3   :  { %v29_v3 = vpack.c.bf16 %v28_v1, %v28_v1 }
   0x4   :  { %12 = vsyncpa [#allocation3], 0  ;;  %v317_v5 = vld [vmem:[%s472_s3 + $0x28] sm:$0xff]  ;;  %v316_v6 = vld [vmem:[%s472_s3 + $0x20] sm:$0xff]  ;;  %s362_s14 = smov [#allocation2]   ;;  %s233_s17 = sshll.u32 %s476_s7, 4  ;;  %s234_s17 = int_to_ptr.hbm [resolvable:$true] %s233_s17 }
   0x5   :  { %246 = vmatmul.msk.bf16.vlgmr.msra.gmra.mxu0 %vm42_vm0, %v29_v3  ;;  %v315_v7 = vld [vmem:[%s472_s3 + $0x18] sm:$0xff]  ;;  %v314_v8 = vld [vmem:[%s472_s3 + $0x10] sm:$0xff]  ;;  %v313_v9 = vld [vmem:[%s472_s3 + $0x8] sm:$0xff]  ;;  %s231_s15 = sshll.u32 %s362_s14, 4  ;;  %s232_s15 = int_to_ptr.vmem [resolvable:$true] %s231_s15 }
   0x6   :  { %130 = vmatpush.bf16.msra.mxu1 %v318_v4  ;;  %v312_v10 = vld [vmem:[%s472_s3] sm:$0xff]  ;;  %v327_v11 = vld [vmem:[%s474_s5 + $0x38] sm:$0xff]  ;;  %v326_v12 = vld [vmem:[%s474_s5 + $0x30] sm:$0xff] }
   0x7   :  { %212 = vmatpush.bf16.msra.mxu2 %v327_v11  ;;  %v325_v13 = vld [vmem:[%s474_s5 + $0x28] sm:$0xff]  ;;  %v324_v14 = vld [vmem:[%s474_s5 + $0x20] sm:$0xff]  ;;  %v323_v15 = vld [vmem:[%s474_s5 + $0x18] sm:$0xff] }
   0x8   :  { %v329_v16 = vld [vmem:[%s471_s2] ss:$0 sm:$0xff]  ;;  %v322_v22 = vld [vmem:[%s474_s5 + $0x10] sm:$0xff]  ;;  %v321_v23 = vld [vmem:[%s474_s5 + $0x8] sm:$0xff] }
   0x9   :  { %v320_v24 = vld [vmem:[%s474_s5] sm:$0xff] }
   0xa   :  { %131 = vmatpush.bf16.msra.mxu1 %v317_v5  ;;  %v330_v25 = vld [vmem:[%s473_s4] ss:$0 sm:$0xff] }
   0xb   :  { %213 = vmatpush.bf16.msra.mxu2 %v326_v12  ;;  %v331_v31 = vld [vmem:[%s475_s6] ss:$0 sm:$0xff] }
   0xe   :  { %132 = vmatpush.bf16.msra.mxu1 %v316_v6 }
   0xf   :  { %214 = vmatpush.bf16.msra.mxu2 %v325_v13 }
  0x12   :  { %133 = vmatpush.bf16.msra.mxu1 %v315_v7 }
  0x13   :  { %215 = vmatpush.bf16.msra.mxu2 %v324_v14 }
  0x16   :  { %134 = vmatpush.bf16.msra.mxu1 %v314_v8 }
  0x17   :  { %216 = vmatpush.bf16.msra.mxu2 %v323_v15 }
  0x1a   :  { %135 = vmatpush.bf16.msra.mxu1 %v313_v9 }
  0x1b   :  { %217 = vmatpush.bf16.msra.mxu2 %v322_v22 }
  0x1e   :  { %136 = vmatpush.bf16.msra.mxu1 %v312_v10 }
  0x1f   :  { %218 = vmatpush.bf16.msra.mxu2 %v321_v23 }
  0x23   :  { %219 = vmatpush.bf16.msra.mxu2 %v320_v24 }
  0x82   :  { %v55_v17 = vpop.f32.mrf.mxu0 }
  0x83   :  { %v56_v18 = vadd.f32 %v329_v16, %v55_v17 }
  0x85   :  { %332 = vtanh.f32 %v56_v18 }
  0x8a   :  { %v57_v19 = vpop.f32.mrf.mxu0 }
  0x8b   :  { %v333_v20 = vpop.eup %332 }
  0x8c   :  { %v60_v21 = vpack.c.bf16 %v333_v20, %v333_v20 }
  0x8e   :  { %137 = vmatmul.bf16.vlgmr.msra.gmra.mxu1 %v60_v21 }
 0x10b   :  { %v138_v26 = vpop.f32.mrf.mxu1 }
 0x10c   :  { %v139_v27 = vadd.f32 %v330_v25, %v138_v26 }
 0x10e   :  { %334 = vtanh.f32 %v139_v27 }
 0x113   :  { %v140_v28 = vpop.f32.mrf.mxu1 }
 0x114   :  { %v335_v29 = vpop.eup %334 }
 0x115   :  { %v143_v30 = vpack.c.bf16 %v335_v29, %v335_v29 }
 0x117   :  { %220 = vmatmul.bf16.vlgmr.msra.gmra.mxu2 %v143_v30 }
 0x19a   :  { %v221_v32 = vpop.f32.mrf.mxu2 }
 0x19b   :  { %v222_v33 = vadd.f32 %v331_v31, %v221_v32 }
 0x19d   :  { %225 = vst [vmem:[#allocation2] sm:$0xff] %v222_v33 }
 0x19e   :  { %236 = dma.vmem_to_hbm [thread:$0]  %s232_s15, 128, %s234_s17, [#allocation3]  }
 0x1a2   :  { %v223_v34 = vpop.f32.mrf.mxu2 }
 0x1a3   :  { %360 = dma.done.wait [#allocation3], 128  }
 0x1a4   :  { %361 = vsyncadd [#allocation3], 4294967168 }
 0x1a5   :  { %241 = vsyncpa [#allocation3], 1 }

</bundles_post_ra>
